<compile_context>
chip_gen: v5e
topology: v5e:2x2
jax: 0.10.0
libtpu: 0.0.40
codegen_flags: <defaults>
</compile_context>

<pallas_src>
import functools

import jax
import jax.numpy as jnp
from jax.experimental import pallas as pl
from jax.experimental.pallas import tpu as pltpu


def _pick_tile_p(Q, B):
    """Lane-dense output-pixel tile: always 128 or 256 (never Q).

    256 fills the 256-wide MXU N dimension on v6e/v7x and halves per-grid-step
    overhead; 128 is used for tiny problems or when B == 1 would otherwise give a
    single-cell grid (v7x has 2 TensorCores to feed).  The wrapper pads Q up to a
    multiple of the tile, so any H*W is supported.
    """
    if Q <= 128:
        return 128
    if Q <= 256:
        return 128 if B == 1 else 256
    return 256


def _scoped_vmem_limit_bytes():
    """~75% of this chip's VMEM, capped at 100 MiB (96 MiB on v5e/v6e, 48 MiB on v7x)."""
    cap = 64 << 20  # conservative fallback (v7x per-TC physical)
    try:
        cap = int(pltpu.get_tpu_info().vmem_capacity_bytes)
    except Exception:
        pass
    return max(32 << 20, min(100 << 20, (cap * 3) // 4))


def _fused_warp_kernel(*refs, C, H, W, Cs):
    if Cs:
        coord_ref, img_ref, seg_ref, out_img_ref, out_seg_ref = refs
    else:
        coord_ref, img_ref, out_img_ref = refs
        seg_ref = out_seg_ref = None

    T = out_img_ref.shape[-1]

    # Absolute sample coordinates for this lane-dense output tile (identity grid
    # was pre-added in the wrapper).  Shapes (1, T).
    py = coord_ref[0:1, :]   # sample row
    px = coord_ref[1:2, :]   # sample col

    h_idx = jax.lax.broadcasted_iota(jnp.int32, (H, T), 0)
    w_idx = jax.lax.broadcasted_iota(jnp.int32, (W, T), 0)

    # ---------------- bilinear warp of the image -----------------------------
    y0f = jnp.floor(py)
    x0f = jnp.floor(px)
    ty = py - y0f
    tx = px - x0f
    y0 = y0f.astype(jnp.int32)
    x0 = x0f.astype(jnp.int32)

    # Separable bilinear weights.  y0 != y0+1 and x0 != x0+1, so nested where is
    # exact; out-of-range corners never match an in-range index -> zeros padding
    # comes for free.
    wy = jnp.where(h_idx == y0, 1.0 - ty, jnp.where(h_idx == y0 + 1, ty, 0.0))  # (H, T)
    wx = jnp.where(w_idx == x0, 1.0 - tx, jnp.where(w_idx == x0 + 1, tx, 0.0))  # (W, T)

    # tmp[c*H + h, p] = sum_w img[c, h, w] * wx[w, p]    (well-filled M = C*H matmul)
    tmp = jax.lax.dot_general(img_ref[...], wx, (((1,), (0,)), ((), ())),
                              preferred_element_type=jnp.float32)               # (C*H, T)
    # out[c, p] = sum_h wy[h, p] * tmp[c, h, p]          (VPU multiply + sublane reduce)
    out = jnp.sum(tmp.reshape(C, H, T) * wy[None, :, :], axis=1)                # (C, T)
    out_img_ref[...] = out.astype(out_img_ref.dtype)

    # ---------------- nearest warp of the segmentation -----------------------
    if Cs:
        yn = jnp.round(py).astype(jnp.int32)
        xn = jnp.round(px).astype(jnp.int32)
        my = jnp.where(h_idx == yn, 1.0, 0.0)                                    # (H, T)
        mx = jnp.where(w_idx == xn, 1.0, 0.0)                                    # (W, T)
        tmp_s = jax.lax.dot_general(seg_ref[...], mx, (((1,), (0,)), ((), ())),
                                    preferred_element_type=jnp.float32)          # (Cs*H, T)
        out_s = jnp.sum(tmp_s.reshape(Cs, H, T) * my[None, :, :], axis=1)        # (Cs, T)
        out_seg_ref[...] = out_s.astype(out_seg_ref.dtype)


def _fused_warp(flow, img, seg=None):
    """flow: (B,2,H,W) f32, img: (B,C,H,W), seg: (B,Cs,H,W) or None."""
    B, C, H, W = img.shape
    Q = H * W
    with_seg = seg is not None
    Cs = seg.shape[1] if with_seg else 0

    tile_p = _pick_tile_p(Q, B)
    n_p = pl.cdiv(Q, tile_p)
    Q_pad = n_p * tile_p

    # Pre-add the identity grid (drops one input stream + a per-step add); pad the
    # output-pixel axis to a tile multiple (padded positions sample pixel (0,0) and
    # are sliced off afterwards).
    iy = jax.lax.broadcasted_iota(jnp.float32, (H, W), 0)
    ix = jax.lax.broadcasted_iota(jnp.float32, (H, W), 1)
    base = jnp.stack([iy, ix]).reshape(1, 2, Q)
    coords = flow.reshape(B, 2, Q).astype(jnp.float32) + base
    if Q_pad != Q:
        coords = jnp.pad(coords, ((0, 0), (0, 0), (0, Q_pad - Q)))

    # Dtype conversions done once in the wrapper, not per p-tile in the kernel.
    img_flat = img.reshape(B, C * H, W).astype(jnp.float32)

    in_specs = [
        pl.BlockSpec((pl.Squeezed(), 2, tile_p), lambda b, p: (b, 0, p)),     # coords (lane-dense)
        pl.BlockSpec((pl.Squeezed(), C * H, W), lambda b, p: (b, 0, 0)),      # image, resident per b
    ]
    inputs = [coords, img_flat]
    out_shape = [jax.ShapeDtypeStruct((B, C, Q_pad), img.dtype)]
    out_specs = [pl.BlockSpec((pl.Squeezed(), C, tile_p), lambda b, p: (b, 0, p))]

    if with_seg:
        seg_flat = seg.reshape(B, Cs * H, W).astype(jnp.float32)              # f32: exact labels
        in_specs.append(pl.BlockSpec((pl.Squeezed(), Cs * H, W), lambda b, p: (b, 0, 0)))
        inputs.append(seg_flat)
        out_shape.append(jax.ShapeDtypeStruct((B, Cs, Q_pad), seg.dtype))
        out_specs.append(pl.BlockSpec((pl.Squeezed(), Cs, tile_p), lambda b, p: (b, 0, p)))

    flops = 2 * B * (C + Cs) * H * W * Q_pad + 2 * B * (C + Cs) * H * Q_pad
    bytes_accessed = 4 * (int(coords.size) + int(img_flat.size)
                          + (int(seg_flat.size) if with_seg else 0)
                          + B * (C + Cs) * Q_pad)

    kernel = functools.partial(_fused_warp_kernel, C=C, H=H, W=W, Cs=Cs)
    outs = pl.pallas_call(
        kernel,
        out_shape=tuple(out_shape) if with_seg else out_shape[0],
        grid=(B, n_p),
        in_specs=in_specs,
        out_specs=tuple(out_specs) if with_seg else out_specs[0],
        compiler_params=pltpu.CompilerParams(
            # batch and output-pixel-tile axes are independent; lets a 2-TensorCore
            # chip (v7x) shard either axis.
            dimension_semantics=("parallel", "parallel"),
            vmem_limit_bytes=int(_scoped_vmem_limit_bytes()),
        ),
        cost_estimate=pl.CostEstimate(flops=int(flops), transcendentals=0,
                                      bytes_accessed=int(bytes_accessed)),
    )(*inputs)

    if with_seg:
        out_img_flat, out_seg_flat = outs
        return (out_img_flat[:, :, :Q].reshape(B, C, H, W),
                out_seg_flat[:, :, :Q].reshape(B, Cs, H, W))
    return outs[:, :, :Q].reshape(B, C, H, W), None


def fixed_decoder_forward(flow_field, I, seg=None):
    """FixedDecoder(integration_steps=0).forward — SpatialTransformer has no parameters."""
    # get_transform with integrate=None, inverse=False is the identity on the flow.
    transform = flow_field
    return _fused_warp(transform, I, seg)


def _ref_warp(img, flow, mode):
    """Pure-JAX reference of grid_sample(align_corners=True, padding_mode='zeros') warp."""
    B, C, H, W = img.shape
    iy = jax.lax.broadcasted_iota(jnp.float32, (H, W), 0)
    ix = jax.lax.broadcasted_iota(jnp.float32, (H, W), 1)
    py = iy[None] + flow[:, 0]
    px = ix[None] + flow[:, 1]

    def sample(yc, xc, w):
        valid = ((yc >= 0) & (yc <= H - 1) & (xc >= 0) & (xc <= W - 1)).astype(img.dtype)
        yci = jnp.clip(yc, 0, H - 1).astype(jnp.int32)
        xci = jnp.clip(xc, 0, W - 1).astype(jnp.int32)
        b_idx = jnp.arange(B)[:, None, None, None]
        c_idx = jnp.arange(C)[None, :, None, None]
        vals = img[b_idx, c_idx, yci[:, None, :, :], xci[:, None, :, :]]
        return vals * (w * valid)[:, None, :, :]

    if mode == "bilinear":
        y0 = jnp.floor(py)
        x0 = jnp.floor(px)
        ty = py - y0
        tx = px - x0
        return (sample(y0, x0, (1 - ty) * (1 - tx))
                + sample(y0, x0 + 1, (1 - ty) * tx)
                + sample(y0 + 1, x0, ty * (1 - tx))
                + sample(y0 + 1, x0 + 1, ty * tx))
    return sample(jnp.round(py), jnp.round(px), jnp.ones_like(py))


if __name__ == "__main__":
    key = jax.random.PRNGKey(0)
    B, C, H, W = 2, 4, 16, 16
    k1, k2, k3 = jax.random.split(key, 3)
    I = jax.random.normal(k1, (B, C, H, W), dtype=jnp.float32)
    flow_field = 3.0 * jax.random.normal(k2, (B, 2, H, W), dtype=jnp.float32)
    seg = jnp.floor(jax.random.uniform(k3, (B, 1, H, W), minval=0.0, maxval=4.0)
                    ).astype(jnp.float32)

    morphed, morphed_seg = fixed_decoder_forward(flow_field, I, seg)
    jax.block_until_ready((morphed, morphed_seg))

    ref_m = _ref_warp(I, flow_field, "bilinear")
    ref_s = _ref_warp(seg, flow_field, "nearest")
    assert morphed.shape == (B, C, H, W) and morphed_seg.shape == (B, 1, H, W)
    assert jnp.allclose(morphed, ref_m, atol=1e-4, rtol=1e-4)
    assert jnp.allclose(morphed_seg, ref_s, atol=1e-4, rtol=1e-4)

    # Also exercise the seg=None path of the forward.
    m2, s2 = fixed_decoder_forward(flow_field, I, None)
    jax.block_until_ready(m2)
    assert s2 is None and jnp.allclose(m2, ref_m, atol=1e-4, rtol=1e-4)

    print("KERNEL_OK")
</pallas_src>

<mosaic_0001>
module attributes {stable_mosaic.version = 11 : i64} {
  func.func @_fused_warp_kernel(%arg0: i32, %arg1: i32, %arg2: memref<1x2x256xf32, #tpu.memory_space<vmem>>, %arg3: memref<1x64x16xf32, #tpu.memory_space<vmem>>, %arg4: memref<1x16x16xf32, #tpu.memory_space<vmem>>, %arg5: memref<1x4x256xf32, #tpu.memory_space<vmem>>, %arg6: memref<1x1x256xf32, #tpu.memory_space<vmem>>) attributes {dimension_semantics = [#tpu.dimension_semantics<parallel>, #tpu.dimension_semantics<parallel>], iteration_bounds = array<i64: 2, 1>, scalar_prefetch = 0 : i64, scratch_operands = 0 : i64, tpu.core_type = #tpu.core_type<tc>, window_params = [{transform_indices = @transform_0, window_bounds = array<i64: 1, 2, 256>}, {transform_indices = @transform_1, window_bounds = array<i64: 1, 64, 16>}, {transform_indices = @transform_2, window_bounds = array<i64: 1, 16, 16>}, {transform_indices = @transform_3, window_bounds = array<i64: 1, 4, 256>}, {transform_indices = @transform_4, window_bounds = array<i64: 1, 1, 256>}]} {
    %c0 = arith.constant 0 : index
    %c0_0 = arith.constant 0 : index
    %c0_1 = arith.constant 0 : index
    %0 = vector.load %arg2[%c0, %c0_0, %c0_1] : memref<1x2x256xf32, #tpu.memory_space<vmem>>, vector<1x1x256xf32>
    %1 = vector.shape_cast %0 : vector<1x1x256xf32> to vector<1x256xf32>
    %c0_2 = arith.constant 0 : index
    %c1 = arith.constant 1 : index
    %c0_3 = arith.constant 0 : index
    %2 = vector.load %arg2[%c0_2, %c1, %c0_3] : memref<1x2x256xf32, #tpu.memory_space<vmem>>, vector<1x1x256xf32>
    %3 = vector.shape_cast %2 : vector<1x1x256xf32> to vector<1x256xf32>
    %4 = tpu.iota {dimensions = array<i32: 0>} : vector<16x256xi32>
    %5 = tpu.iota {dimensions = array<i32: 0>} : vector<16x256xi32>
    %6 = math.floor %1 : vector<1x256xf32>
    %7 = math.floor %3 : vector<1x256xf32>
    %8 = arith.subf %1, %6 : vector<1x256xf32>
    %9 = arith.subf %3, %7 : vector<1x256xf32>
    %10 = arith.fptosi %6 : vector<1x256xf32> to vector<1x256xi32>
    %11 = arith.fptosi %7 : vector<1x256xf32> to vector<1x256xi32>
    %12 = vector.broadcast %10 : vector<1x256xi32> to vector<16x256xi32>
    %13 = arith.cmpi eq, %4, %12 : vector<16x256xi32>
    %cst = arith.constant 1.000000e+00 : f32
    %14 = vector.broadcast %cst : f32 to vector<1x256xf32>
    %15 = arith.subf %14, %8 : vector<1x256xf32>
    %c1_i32 = arith.constant 1 : i32
    %16 = vector.broadcast %c1_i32 : i32 to vector<1x256xi32>
    %17 = arith.addi %10, %16 : vector<1x256xi32>
    %18 = vector.broadcast %17 : vector<1x256xi32> to vector<16x256xi32>
    %19 = arith.cmpi eq, %4, %18 : vector<16x256xi32>
    %cst_4 = arith.constant 0.000000e+00 : f32
    %20 = vector.shape_cast %8 : vector<1x256xf32> to vector<1x256xf32>
    %21 = vector.broadcast %20 : vector<1x256xf32> to vector<16x256xf32>
    %22 = vector.broadcast %cst_4 : f32 to vector<16x256xf32>
    %23 = arith.select %19, %21, %22 : vector<16x256xi1>, vector<16x256xf32>
    %24 = vector.shape_cast %15 : vector<1x256xf32> to vector<1x256xf32>
    %25 = vector.broadcast %24 : vector<1x256xf32> to vector<16x256xf32>
    %26 = arith.select %13, %25, %23 : vector<16x256xi1>, vector<16x256xf32>
    %27 = vector.broadcast %11 : vector<1x256xi32> to vector<16x256xi32>
    %28 = arith.cmpi eq, %5, %27 : vector<16x256xi32>
    %cst_5 = arith.constant 1.000000e+00 : f32
    %29 = vector.broadcast %cst_5 : f32 to vector<1x256xf32>
    %30 = arith.subf %29, %9 : vector<1x256xf32>
    %c1_i32_6 = arith.constant 1 : i32
    %31 = vector.broadcast %c1_i32_6 : i32 to vector<1x256xi32>
    %32 = arith.addi %11, %31 : vector<1x256xi32>
    %33 = vector.broadcast %32 : vector<1x256xi32> to vector<16x256xi32>
    %34 = arith.cmpi eq, %5, %33 : vector<16x256xi32>
    %cst_7 = arith.constant 0.000000e+00 : f32
    %35 = vector.shape_cast %9 : vector<1x256xf32> to vector<1x256xf32>
    %36 = vector.broadcast %35 : vector<1x256xf32> to vector<16x256xf32>
    %37 = vector.broadcast %cst_7 : f32 to vector<16x256xf32>
    %38 = arith.select %34, %36, %37 : vector<16x256xi1>, vector<16x256xf32>
    %39 = vector.shape_cast %30 : vector<1x256xf32> to vector<1x256xf32>
    %40 = vector.broadcast %39 : vector<1x256xf32> to vector<16x256xf32>
    %41 = arith.select %28, %40, %38 : vector<16x256xi1>, vector<16x256xf32>
    %c0_8 = arith.constant 0 : index
    %c0_9 = arith.constant 0 : index
    %c0_10 = arith.constant 0 : index
    %42 = vector.load %arg3[%c0_8, %c0_9, %c0_10] : memref<1x64x16xf32, #tpu.memory_space<vmem>>, vector<1x64x16xf32>
    %43 = vector.shape_cast %42 : vector<1x64x16xf32> to vector<64x16xf32>
    %cst_11 = arith.constant dense<0.000000e+00> : vector<64x256xf32>
    %44 = tpu.matmul %43, %41, %cst_11 {dimension_numbers = #tpu.dot_dimension_numbers<[1], [0], [0], [1], [0, 0, 1, 1], [], []>} : vector<64x16xf32>, vector<16x256xf32>, vector<64x256xf32> -> vector<64x256xf32>
    %45 = vector.shape_cast %44 : vector<64x256xf32> to vector<4x16x256xf32>
    %46 = vector.shape_cast %26 : vector<16x256xf32> to vector<1x16x256xf32>
    %47 = vector.broadcast %46 : vector<1x16x256xf32> to vector<4x16x256xf32>
    %48 = arith.mulf %45, %47 : vector<4x16x256xf32>
    %cst_12 = arith.constant dense<0.000000e+00> : vector<4x256xf32>
    %49 = vector.multi_reduction <add>, %48, %cst_12 [1] : vector<4x16x256xf32> to vector<4x256xf32>
    %c0_13 = arith.constant 0 : index
    %c0_14 = arith.constant 0 : index
    %c0_15 = arith.constant 0 : index
    %50 = vector.load %arg5[%c0_13, %c0_14, %c0_15] : memref<1x4x256xf32, #tpu.memory_space<vmem>>, vector<1x4x256xf32>
    %51 = vector.shape_cast %50 : vector<1x4x256xf32> to vector<4x256xf32>
    %52 = vector.shape_cast %49 : vector<4x256xf32> to vector<1x4x256xf32>
    tpu.vector_store %arg5[%c0_13, %c0_14, %c0_15], %52 {strides = array<i32>} : memref<1x4x256xf32, #tpu.memory_space<vmem>>, vector<1x4x256xf32>,
    %53 = math.roundeven %1 : vector<1x256xf32>
    %54 = arith.fptosi %53 : vector<1x256xf32> to vector<1x256xi32>
    %55 = math.roundeven %3 : vector<1x256xf32>
    %56 = arith.fptosi %55 : vector<1x256xf32> to vector<1x256xi32>
    %57 = vector.broadcast %54 : vector<1x256xi32> to vector<16x256xi32>
    %58 = arith.cmpi eq, %4, %57 : vector<16x256xi32>
    %cst_16 = arith.constant 1.000000e+00 : f32
    %cst_17 = arith.constant 0.000000e+00 : f32
    %59 = vector.broadcast %cst_16 : f32 to vector<16x256xf32>
    %60 = vector.broadcast %cst_17 : f32 to vector<16x256xf32>
    %61 = arith.select %58, %59, %60 : vector<16x256xi1>, vector<16x256xf32>
    %62 = vector.broadcast %56 : vector<1x256xi32> to vector<16x256xi32>
    %63 = arith.cmpi eq, %5, %62 : vector<16x256xi32>
    %cst_18 = arith.constant 1.000000e+00 : f32
    %cst_19 = arith.constant 0.000000e+00 : f32
    %64 = vector.broadcast %cst_18 : f32 to vector<16x256xf32>
    %65 = vector.broadcast %cst_19 : f32 to vector<16x256xf32>
    %66 = arith.select %63, %64, %65 : vector<16x256xi1>, vector<16x256xf32>
    %c0_20 = arith.constant 0 : index
    %c0_21 = arith.constant 0 : index
    %c0_22 = arith.constant 0 : index
    %67 = vector.load %arg4[%c0_20, %c0_21, %c0_22] : memref<1x16x16xf32, #tpu.memory_space<vmem>>, vector<1x16x16xf32>
    %68 = vector.shape_cast %67 : vector<1x16x16xf32> to vector<16x16xf32>
    %cst_23 = arith.constant dense<0.000000e+00> : vector<16x256xf32>
    %69 = tpu.matmul %68, %66, %cst_23 {dimension_numbers = #tpu.dot_dimension_numbers<[1], [0], [0], [1], [0, 0, 1, 1], [], []>} : vector<16x16xf32>, vector<16x256xf32>, vector<16x256xf32> -> vector<16x256xf32>
    %70 = vector.shape_cast %69 : vector<16x256xf32> to vector<1x16x256xf32>
    %71 = vector.shape_cast %61 : vector<16x256xf32> to vector<1x16x256xf32>
    %72 = arith.mulf %70, %71 : vector<1x16x256xf32>
    %cst_24 = arith.constant dense<0.000000e+00> : vector<1x256xf32>
    %73 = vector.multi_reduction <add>, %72, %cst_24 [1] : vector<1x16x256xf32> to vector<1x256xf32>
    %c0_25 = arith.constant 0 : index
    %c0_26 = arith.constant 0 : index
    %c0_27 = arith.constant 0 : index
    %74 = vector.load %arg6[%c0_25, %c0_26, %c0_27] : memref<1x1x256xf32, #tpu.memory_space<vmem>>, vector<1x1x256xf32>
    %75 = vector.shape_cast %74 : vector<1x1x256xf32> to vector<1x256xf32>
    %76 = vector.shape_cast %73 : vector<1x256xf32> to vector<1x1x256xf32>
    tpu.vector_store %arg6[%c0_25, %c0_26, %c0_27], %76 {strides = array<i32>} : memref<1x1x256xf32, #tpu.memory_space<vmem>>, vector<1x1x256xf32>,
    return
  }
  func.func @transform_0(%arg0: i32, %arg1: i32) -> (i32, i32, i32) {
    %c0_i32 = arith.constant 0 : i32
    %c0_i32_0 = arith.constant 0 : i32
    return %arg0, %c0_i32, %arg1 : i32, i32, i32
  }
  func.func @transform_1(%arg0: i32, %arg1: i32) -> (i32, i32, i32) {
    %c0_i32 = arith.constant 0 : i32
    %c0_i32_0 = arith.constant 0 : i32
    %c0_i32_1 = arith.constant 0 : i32
    return %arg0, %c0_i32, %c0_i32_0 : i32, i32, i32
  }
  func.func @transform_2(%arg0: i32, %arg1: i32) -> (i32, i32, i32) {
    %c0_i32 = arith.constant 0 : i32
    %c0_i32_0 = arith.constant 0 : i32
    %c0_i32_1 = arith.constant 0 : i32
    return %arg0, %c0_i32, %c0_i32_0 : i32, i32, i32
  }
  func.func @transform_3(%arg0: i32, %arg1: i32) -> (i32, i32, i32) {
    %c0_i32 = arith.constant 0 : i32
    %c0_i32_0 = arith.constant 0 : i32
    return %arg0, %c0_i32, %arg1 : i32, i32, i32
  }
  func.func @transform_4(%arg0: i32, %arg1: i32) -> (i32, i32, i32) {
    %c0_i32 = arith.constant 0 : i32
    %c0_i32_0 = arith.constant 0 : i32
    return %arg0, %c0_i32, %arg1 : i32, i32, i32
  }
}

</mosaic_0001>

<bundles_post_ra>
// kernel: tpu_custom_call.1
= control target key start
LH: loop header
LB: loop body
LE: loop exit
PB: predicated region body
PF: predicated region fallthrough
CT: control target
= control target key end

     0   :  { %10 = vsyncpa [#allocation3], 0  ;;  %s1374_s0 = inlined_call_operand.vmem [shape: f32[2,2,256], index: 0, kind: input, shape index: {}]   ;;  %s1375_s1 = inlined_call_operand.vmem [shape: f32[2,64,16], index: 1, kind: input, shape index: {}]   ;;  %s1376_s2 = inlined_call_operand.vmem [shape: f32[2,16,16], index: 2, kind: input, shape index: {}]   ;;  %s1377_s3 = inlined_call_operand.hbm [shape: f32[2,4,256], index: 3, kind: output, shape index: {0}]   ;;  %s1378_s4 = inlined_call_operand.hbm [shape: f32[2,1,256], index: 4, kind: output, shape index: {1}]  }
   0x1   :  { %12 = vsyncpa [#allocation3 + $0x1], 0 }
   0x2   :  { %13 = vsyncpa [#allocation5], 0 }
   0x3   :  { %15 = vsyncpa [#allocation5 + $0x1], 0  ;;  %s1122_s15 = smov 0   ;;  %s1124_s16 = smov 0  }
   0x4   :  { %s1126_s17 = smov 0   ;;  %s1128_s18 = smov 0  }
   0x5   :  { %s1130_s19 = smov 0   ;;  %s1132_s20 = smov 0  }
   0x6 LB: > { %s858_s21 = sadd.s32 4294967295, %s1093_s20   ;;  %s859_s22 = sadd.s32 4294967294, %s1093_s20   ;;  %s1093_s20 = sphi %s1132_s20, %s21_s20   ;;  %s1089_s19 = sphi %s1130_s19, %s1391_s19   ;;  %s1085_s18 = sphi %s1128_s18, %s1390_s18   ;;  %s1081_s17 = sphi %s1126_s17, %s1389_s17   ;;  %s1077_s16 = sphi %s1124_s16, %s1388_s16   ;;  %s1073_s15 = sphi %s1122_s15, %s1387_s15  }
   0x7   : > { %s33_s23 = sadd.s32 1, %s1089_s19  ;;  %s122_s24 = sadd.s32 1, %s1081_s17 }
   0x8   : > { %p35_p0 = scmp.ge.s32.totalorder %s33_s23, 2  ;;  %p132_p1 = scmp.ne.s32.totalorder %s1081_s17, %s1077_s16 }
   0x9   : > { %p133_p2 = scmp.eq.s32.totalorder %s858_s21, 1  ;;  %p138_p3 = scmp.ne.s32.totalorder %s1077_s16, %s1073_s15 }
   0xa   : > { %s1393_s23 = smov (%p35_p0, %s33_s23), 0  ;;  %p139_p5 = scmp.eq.s32.totalorder %s859_s22, 1 }
   0xb   : > { %p1162_p4 = por %p133_p2, %p132_p1  ;;  %s117_s26 = ssub.s32 %s1089_s19, %s1393_s23 }
   0xc   : > { %p862_p6 = scmp.ge.s32.totalorder %s1093_s20, 1  ;;  %p120_p7 = scmp.eq.s32.totalorder %s117_s26, 0 }
   0xd   : > { %p1169_p8 = por %p139_p5, %p138_p3  ;;  %p214_p9 = scmp.lt.s32.totalorder %s1093_s20, 3 }
   0xe   : > { %s1175_s28 = scalar_select %p120_p7, %s1081_s17, %s122_s24  }
   0xf   : > { %p215_p10 = pnand %p862_p6, %p214_p9 }
  0x10   : > { %p260_p11 = scmp.lt.s32.totalorder (!%p215_p10), %s1085_s18, 1  ;;  %s1295_s22 = sand.u32 (!%p215_p10), 1, %s1077_s16  }
  0x11   : > { %218 = sbr.rel (%p215_p10) target bundleno = 241 (0xf1), region = 32  ;;  %s863_s24 = sshll.u32 (!%p215_p10), %s1295_s22, 3 }
  0x12   : > { %s906_s26 = sshll.u32 (!%p215_p10), %s1085_s18, 3  ;;  %s251_s10 = scalar_lea.vmem (!%p215_p10), [#allocation2], %s863_s24 }
  0x13   : > { %s684_s24 = scalar_lea.sflag (!%p215_p10), [#allocation3], %s1295_s22  ;;  %s1003_s6 = scalar_lea.hbm (!%p215_p10), %s1377_s3, 16 }
  0x16   : > { %v284_v0 = vlaneseq  ;;  %s1179_s29 = scalar_select %p260_p11, %s1085_s18, 1  ;;  %vm365_vm8 = vcmask 130048   ;;  %v1095_v32 = vmov 1.0  }
  0x18   : > { %s903_s30 = sshll.u32 %s1179_s29, 2  ;;  %v1188_v1 = vshrl.u32 %v284_v0, 7  ;;  %s904_s8 = sshll.u32 %s1179_s29, 6 }
  0x19   : > { %s1185_s7 = scalar_lea.vmem %s1374_s0, %s903_s30  ;;  %s1214_s11 = scalar_lea.vmem %s1375_s1, %s904_s8 }
  0x1a   : > { %v871_v2 = vld [vmem:[%s1185_s7 + $0x1] ss:$2 sm:$0x3]  ;;  %v1192_v5 = vadd.s32 8, %v1188_v1  ;;  %v362_v31 = vld [vmem:[%s1214_s11 + $0x28] sm:$0xff]  ;;  %v363_v34 = vld [vmem:[%s1214_s11 + $0x30] sm:$0xff] }
  0x1b   : > { %v288_v3 = vfloor.f32 %v871_v2  ;;  %v920_v4 = vcvt.f32.s32 %v871_v2  ;;  %v357_v30 = vld [vmem:[%s1214_s11] sm:$0xff]  ;;  %v358_v33 = vld [vmem:[%s1214_s11 + $0x8] sm:$0xff]  ;;  %v359_v35 = vld [vmem:[%s1214_s11 + $0x10] sm:$0xff]  ;;  %s905_s12 = sshll.u32 %s1179_s29, 4  ;;  %s864_s29 = sshll.u32 %s1295_s22, 1 }
  0x1c   : > { %v364_v36 = vld [vmem:[%s1214_s11 + $0x38] sm:$0xff]  ;;  %s278_s21 = scalar_lea.vmem %s1376_s2, %s905_s12  ;;  %v361_v39 = vld [vmem:[%s1214_s11 + $0x20] sm:$0xff]  ;;  %s900_s30 = sshll.u32 %s1085_s18, 1 }
  0x1d   : > { %v290_v6 = vsub.f32 %v871_v2, %v288_v3  ;;  %v914_v7 = vcvt.f32.s32 %v288_v3  ;;  %v591_v14 = vperm.slane %v920_v4, 1  ;;  %v590_v28 = vperm.slane %v920_v4, 0  ;;  %v360_v37 = vld [vmem:[%s1214_s11 + $0x18] sm:$0xff]  ;;  %v600_v38 = vld [vmem:[%s278_s21] sm:$0xff]  ;;  %v601_v40 = vld [vmem:[%s278_s21 + $0x8] sm:$0xff]  ;;  %s718_s18 = scalar_lea.hbm %s1378_s4, %s900_s30  ;;  %s704_s11 = sshll.u32 %s251_s10, 4  ;;  %s705_s11 = int_to_ptr.vmem [resolvable:$true] %s704_s11 }
  0x1e   : > { %v1257_v41 = vld [vmem:[%s1185_s7] ss:$2 sm:$0x3]  ;;  %s702_s7 = scalar_lea.hbm %s1377_s3, %s906_s26  ;;  %s1311_s13 = scalar_lea.vmem [#allocation4], %s864_s29 }
  0x1f   : > { %v325_v8 = vperm.slane %v914_v7, 0  ;;  %v331_v9 = vsub.f32 1.0, %v290_v6  ;;  %v332_v10 = vadd.s32 1, %v914_v7  ;;  %v340_v11 = vperm.slane %v290_v6, 0  ;;  %s706_s12 = sshll.u32 %s702_s7, 4  ;;  %s720_s14 = sshll.u32 %s1311_s13, 4  ;;  %s707_s12 = int_to_ptr.hbm [resolvable:$true] %s706_s12  ;;  %s1320_s14 = int_to_ptr.vmem [resolvable:$true] %s720_s14 }
  0x20   : > { %v326_v12 = vperm.slane %v914_v7, 1  ;;  %v341_v13 = vperm.slane %v290_v6, 1  ;;  %vm595_vm9 = vcmp.eq.s32.totalorder %v1192_v5, %v591_v14  ;;  %vm594_vm10 = vcmp.eq.s32.totalorder %v1192_v5, %v590_v28  ;;  %s722_s21 = sshll.u32 %s718_s18, 4  ;;  %s997_s26 = sshra.s32 %s707_s12, 4  ;;  %s1322_s21 = int_to_ptr.hbm [resolvable:$true] %s722_s21  ;;  %s998_s26 = int_to_ptr.hbm [resolvable:$true] %s997_s26 }
  0x21   : > { %vm1195_vm0 = vcmp.eq.s32.totalorder %v1192_v5, %v325_v8  ;;  %v333_v16 = vperm.slane %v332_v10, 0  ;;  %v349_v17 = vperm.slane %v331_v9, 0  ;;  %v334_v18 = vperm.slane %v332_v10, 1  ;;  %s999_s29 = scalar_lea.hbm %s998_s26, 8  ;;  %p1004_p1 = scmp.lt.s32.totalorder %s998_s26, %s1377_s3 }
  0x22   : > { %vm330_vm1 = vcmp.eq.s32.totalorder %v1192_v5, %v326_v12  ;;  %v350_v19 = vperm.slane %v331_v9, 1  ;;  %vm327_vm2 = vcmp.eq.s32.totalorder %v1188_v1, %v325_v8  ;;  %vm1203_vm3 = vcmp.eq.s32.totalorder %v1188_v1, %v326_v12  ;;  %p1000_p12 = scmp.ne.s32.totalorder %s998_s26, %s999_s29  ;;  %p1005_p2 = scmp.lt.s32.totalorder %s1003_s6, %s999_s29 }
  0x23   : > { %vm337_vm4 = vcmp.eq.s32.totalorder %v1192_v5, %v333_v16  ;;  %vm338_vm5 = vcmp.eq.s32.totalorder %v1192_v5, %v334_v18  ;;  %vm335_vm6 = vcmp.eq.s32.totalorder %v1188_v1, %v333_v16  ;;  %vm336_vm7 = vcmp.eq.s32.totalorder %v1188_v1, %v334_v18 }
  0x24   : > { %v346_v21 = vsel %vm337_vm4, %v340_v11, 0.0  ;;  %v347_v22 = vsel %vm338_vm5, %v341_v13, 0.0  ;;  %v344_v23 = vsel %vm335_vm6, %v340_v11, 0.0  ;;  %v345_v24 = vsel %vm336_vm7, %v341_v13, 0.0  ;;  %p1001_p13 = pnand %p1000_p12, %p1162_p4  ;;  %p1006_p3 = por %p1005_p2, %p1004_p1 }
  0x25   : > { %v355_v25 = vsel %vm1195_vm0, %v349_v17, %v346_v21  ;;  %v356_v26 = vsel %vm330_vm1, %v350_v19, %v347_v22  ;;  %v353_v27 = vsel %vm327_vm2, %v349_v17, %v344_v23  ;;  %v354_v29 = vsel %vm1203_vm3, %v350_v19, %v345_v24 }
  0x26   : > { %404 = vmatpush.msra.mxu0 %v355_v25  ;;  %907 = vmatpush.msra.mxu2 %v355_v25  ;;  %vm593_vm11 = vcmp.eq.s32.totalorder %v1188_v1, %v591_v14  ;;  %vm592_vm12 = vcmp.eq.s32.totalorder %v1188_v1, %v590_v28  ;;  %v287_v42 = vfloor.f32 %v1257_v41  ;;  %v917_v23 = vcvt.f32.s32 %v1257_v41  ;;  %p1002_p0 = pneg %p1001_p13 }
  0x27   : > { %445 = vmatpush.msra.mxu1 %v356_v26  ;;  %909 = vmatpush.msra.mxu3 %v356_v26 }
  0x28   : > { %405 = vmatpush.msra.mxu0 %v353_v27  ;;  %908 = vmatpush.msra.mxu2 %v353_v27  ;;  %v912_v43 = vcvt.f32.s32 %v287_v42  ;;  %v289_v45 = vsub.f32 %v1257_v41, %v287_v42  ;;  %p1007_p5 = pnand %p1006_p3, %p1002_p0 }
  0x29   : > { %446 = vmatpush.msra.mxu1 %v354_v29  ;;  %910 = vmatpush.msra.mxu3 %v354_v29 }
  0x2a   : > { %872 = vmatmul.msk.f32.vlgmr.msra.gmra.mxu0 %vm365_vm8, %v357_v30  ;;  %877 = vmatmul.msk.f32.vlgmr.msra.gmra.mxu2 %vm365_vm8, %v362_v31  ;;  %v300_v44 = vadd.s32 1, %v912_v43  ;;  %v299_v49 = vsub.f32 1.0, %v289_v45  ;;  %v294_v50 = vperm.slane %v912_v43, 1  ;;  %v309_v51 = vperm.slane %v289_v45, 1 }
  0x2b   : > { %880 = vmatmul.msk.f32.vlgmr.msra.gmra.mxu1 %vm365_vm8, %v357_v30  ;;  %885 = vmatmul.msk.f32.vlgmr.msra.gmra.mxu3 %vm365_vm8, %v362_v31  ;;  %v293_v60 = vperm.slane %v912_v43, 0  ;;  %v308_v61 = vperm.slane %v289_v45, 0 }
  0x2c   : > { %892 = vmatpush.msk.msrb.mxu3 %vm595_vm9, %v1095_v32  ;;  %888 = vmatpush.msk.msrb.mxu2 %vm594_vm10, %v1095_v32  ;;  %v302_v48 = vperm.slane %v300_v44, 1  ;;  %v301_v53 = vperm.slane %v300_v44, 0  ;;  %vm296_vm15 = vcmp.eq.s32.totalorder %v1188_v1, %v294_v50  ;;  %v318_v55 = vperm.slane %v299_v49, 1 }
  0x2d   : > { %vm298_vm1 = vcmp.eq.s32.totalorder %v1192_v5, %v294_v50  ;;  %vm297_vm3 = vcmp.eq.s32.totalorder %v1192_v5, %v293_v60  ;;  %v317_v3 = vperm.slane %v299_v49, 0  ;;  %vm295_vm4 = vcmp.eq.s32.totalorder %v1188_v1, %v293_v60 }
  0x2e   : > { %893 = vmatpush.msk.msrb.mxu3 %vm593_vm11, %v1095_v32  ;;  %889 = vmatpush.msk.msrb.mxu2 %vm592_vm12, %v1095_v32  ;;  %vm304_vm13 = vcmp.eq.s32.totalorder %v1188_v1, %v302_v48  ;;  %vm306_vm14 = vcmp.eq.s32.totalorder %v1192_v5, %v302_v48  ;;  %vm305_vm0 = vcmp.eq.s32.totalorder %v1192_v5, %v301_v53  ;;  %vm556_vm9 = vcmask 1043456  }
  0x2f   : > { %v313_v57 = vsel %vm304_vm13, %v309_v51, 0.0  ;;  %v315_v58 = vsel %vm306_vm14, %v309_v51, 0.0  ;;  %vm303_vm2 = vcmp.eq.s32.totalorder %v1188_v1, %v301_v53  ;;  %v314_v63 = vsel %vm305_vm0, %v308_v61, 0.0 }
  0x30   : > { %v1271_v62 = vsel %vm296_vm15, %v318_v55, %v313_v57  ;;  %v324_v2 = vsel %vm298_vm1, %v318_v55, %v315_v58  ;;  %v312_v6 = vsel %vm303_vm2, %v308_v61, 0.0  ;;  %v323_v9 = vsel %vm297_vm3, %v317_v3, %v314_v63 }
  0x31   : > { %v321_v12 = vsel %vm295_vm4, %v317_v3, %v312_v6  ;;  %vm562_vm10 = vcmask 1041409   ;;  %vm564_vm11 = vcmask 1045509   ;;  %vm567_vm12 = vcmask 1042434  }
  0x32   : > { %873 = vmatmul.msk.f32.gmra.mxu0 %vm365_vm8, %v358_v33  ;;  %878 = vmatmul.msk.f32.gmra.mxu2 %vm365_vm8, %v363_v34  ;;  %vm569_vm13 = vcmask 1046534   ;;  %vm572_vm14 = vcmask 1043459   ;;  %vm574_vm15 = vcmask 1047559   ;;  %vm675_vm0 = vcmask 1040384  }
  0x33   : > { %881 = vmatmul.msk.f32.gmra.mxu1 %vm365_vm8, %v358_v33  ;;  %886 = vmatmul.msk.f32.gmra.mxu3 %vm365_vm8, %v363_v34  ;;  %vm1316_vm1 = vcmp.lt.s32.totalorder %v284_v0, 256 }
  0x3a   : > { %874 = vmatmul.msk.f32.gmra.mxu0 %vm365_vm8, %v359_v35  ;;  %879 = vmatmul.msk.f32.gmra.mxu2 %vm365_vm8, %v364_v36 }
  0x3b   : > { %882 = vmatmul.msk.f32.gmra.mxu1 %vm365_vm8, %v359_v35  ;;  %887 = vmatmul.msk.f32.gmra.mxu3 %vm365_vm8, %v364_v36 }
  0x42   : > { %875 = vmatmul.msk.f32.gmra.mxu0 %vm365_vm8, %v360_v37  ;;  %890 = vmatmul.msk.f32.vlgmr.msrb.gmra.mxu2 %vm365_vm8, %v600_v38 }
  0x43   : > { %883 = vmatmul.msk.f32.gmra.mxu1 %vm365_vm8, %v360_v37  ;;  %894 = vmatmul.msk.f32.vlgmr.msrb.gmra.mxu3 %vm365_vm8, %v600_v38  ;;  %v580_v37 = vperm.slane %v917_v23, 0  ;;  %v581_v38 = vperm.slane %v917_v23, 1 }
  0x45   : > { %vm582_vm5 = vcmp.eq.s32.totalorder %v1188_v1, %v580_v37  ;;  %vm583_vm6 = vcmp.eq.s32.totalorder %v1188_v1, %v581_v38  ;;  %vm584_vm7 = vcmp.eq.s32.totalorder %v1192_v5, %v580_v37 }
  0x4a   : > { %876 = vmatmul.msk.f32.gmra.mxu0 %vm365_vm8, %v361_v39  ;;  %891 = vmatmul.msk.f32.gmra.mxu2 %vm365_vm8, %v601_v40 }
  0x4b   : > { %884 = vmatmul.msk.f32.gmra.mxu1 %vm365_vm8, %v361_v39  ;;  %895 = vmatmul.msk.f32.gmra.mxu3 %vm365_vm8, %v601_v40  ;;  %vm585_vm8 = vcmp.eq.s32.totalorder %v1192_v5, %v581_v38 }
  0xa7   : > { %v407_v46 = vpop.f32.mrf.mxu0 }
  0xa8   : > { %v448_v47 = vpop.f32.mrf.mxu1  ;;  %v472_v16 = vmul.f32 %v407_v46, %v321_v12 }
  0xa9   : > { %v473_v8 = vmul.f32 %v448_v47, %v1271_v62 }
  0xad   : > { %v1262_v52 = vpop.f32.mrf.mxu2 }
  0xae   : > { %v1265_v54 = vpop.f32.mrf.mxu3  ;;  %v482_v50 = vmul.f32 %v1262_v52, %v323_v9 }
  0xaf   : > { %v410_v56 = vpop.f32.mrf.mxu0  ;;  %v483_v61 = vmul.f32 %v1265_v54, %v324_v2 }
  0xb0   : > { %v451_v59 = vpop.f32.mrf.mxu1  ;;  %v474_v15 = vmul.f32 %v410_v56, %v323_v9 }
  0xb1   : > { %v475_v4 = vmul.f32 %v451_v59, %v324_v2 }
  0xb2   : > { %v488_v18 = vadd.f32 %v474_v15, %v472_v16 }
  0xb3   : > { %v495_v13 = vadd.f32 %v475_v4, %v473_v8 }
  0xb4   : > { %v489_v32 = vrot.slane %v488_v18, 4 }
  0xb5   : > { %v425_v7 = vpop.f32.mrf.mxu2  ;;  %v496_v17 = vrot.slane %v495_v13, 4 }
  0xb6   : > { %v466_v10 = vpop.f32.mrf.mxu3  ;;  %v484_v20 = vmul.f32 %v425_v7, %v321_v12  ;;  %v490_v44 = vadd.f32 %v489_v32, %v488_v18  ;;  %v1096_v7 = vmov 0.0  }
  0xb7   : > { %v413_v11 = vpop.f32.mrf.mxu0  ;;  %v485_v24 = vmul.f32 %v466_v10, %v1271_v62  ;;  %v497_v27 = vadd.f32 %v496_v17, %v495_v13  ;;  %v586_v52 = vsel %vm582_vm5, 1.0, %v1096_v7  ;;  %v587_v8 = vsel %vm583_vm6, 1.0, %v1096_v7 }
  0xb8   : > { %v454_v14 = vpop.f32.mrf.mxu1  ;;  %v476_v28 = vmul.f32 %v413_v11, %v321_v12  ;;  %v491_v63 = vrot.slane %v490_v44, 2 }
  0xb9   : > { %v477_v33 = vmul.f32 %v454_v14, %v1271_v62  ;;  %v498_v41 = vrot.slane %v497_v27, 2 }
  0xba   : > { %v492_v15 = vadd.f32 %v491_v63, %v490_v44 }
  0xbb   : > { %v499_v56 = vadd.f32 %v498_v41, %v497_v27 }
  0xbd   : > { %v428_v19 = vpop.f32.mrf.mxu2  ;;  %v500_v54 = vrot.slane %v499_v56, 1 }
  0xbe   : > { %v486_v21 = vmul.f32 %v428_v19, %v323_v9  ;;  %v469_v22 = vpop.f32.mrf.mxu3 }
  0xbf   : > { %v487_v25 = vmul.f32 %v469_v22, %v324_v2  ;;  %v416_v26 = vpop.f32.mrf.mxu0 }
  0xc0   : > { %v530_v29 = vadd.f32 %v486_v21, %v484_v20  ;;  %v478_v30 = vmul.f32 %v416_v26, %v323_v9  ;;  %v457_v31 = vpop.f32.mrf.mxu1 }
  0xc1   : > { %v537_v34 = vadd.f32 %v487_v25, %v485_v24  ;;  %v479_v35 = vmul.f32 %v457_v31, %v324_v2 }
  0xc2   : > { %v502_v36 = vadd.f32 %v478_v30, %v476_v28  ;;  %v531_v42 = vrot.slane %v530_v29, 4  ;;  %v501_v28 = vadd.f32 %v500_v54, %v499_v56 }
  0xc3   : > { %v538_v39 = vrot.slane %v537_v34, 4  ;;  %v509_v40 = vadd.f32 %v479_v35, %v477_v33  ;;  %v493_v35 = vrot.slane %v492_v15, 1 }
  0xc4   : > { %v503_v43 = vrot.slane %v502_v36, 4  ;;  %v532_v57 = vadd.f32 %v531_v42, %v530_v29  ;;  %v552_v42 = vrot.slane %v501_v28, 4 }
  0xc5   : > { %v539_v45 = vadd.f32 %v538_v39, %v537_v34  ;;  %v510_v46 = vrot.slane %v509_v40, 4  ;;  %v625_v47 = vpop.f32.mrf.mxu2 }
  0xc6   : > { %v504_v48 = vadd.f32 %v503_v43, %v502_v36  ;;  %v648_v49 = vpop.f32.mrf.mxu3  ;;  %v533_v2 = vrot.slane %v532_v57, 2  ;;  %v654_v1 = vmul.f32 %v625_v47, %v586_v52 }
  0xc7   : > { %v540_v51 = vrot.slane %v539_v45, 2  ;;  %v511_v53 = vadd.f32 %v510_v46, %v509_v40  ;;  %v419_v55 = vpop.f32.mrf.mxu0  ;;  %v655_v20 = vmul.f32 %v648_v49, %v587_v8 }
  0xc8   : > { %v505_v58 = vrot.slane %v504_v48, 2  ;;  %v480_v59 = vmul.f32 %v419_v55, %v321_v12  ;;  %v460_v60 = vpop.f32.mrf.mxu1  ;;  %v588_v12 = vsel %vm584_vm7, 1.0, %v1096_v7  ;;  %v534_v29 = vadd.f32 %v533_v2, %v532_v57 }
  0xc9   : > { %v512_v3 = vrot.slane %v511_v53, 2  ;;  %v481_v4 = vmul.f32 %v460_v60, %v1271_v62  ;;  %v541_v10 = vadd.f32 %v540_v51, %v539_v45  ;;  %v589_v62 = vsel %vm585_vm8, 1.0, %v1096_v7 }
  0xca   : > { %v506_v6 = vadd.f32 %v505_v58, %v504_v48  ;;  %v516_v9 = vadd.f32 %v482_v50, %v480_v59  ;;  %v535_v44 = vrot.slane %v534_v29, 1  ;;  %v494_v48 = vadd.f32 %v493_v35, %v492_v15 }
  0xcb   : > { %v513_v11 = vadd.f32 %v512_v3, %v511_v53  ;;  %v523_v13 = vadd.f32 %v483_v61, %v481_v4  ;;  %v542_v24 = vrot.slane %v541_v10, 1 }
  0xcc   : > { %v517_v14 = vrot.slane %v516_v9, 4  ;;  %v507_v16 = vrot.slane %v506_v6, 1  ;;  %v557_v57 = vsel %vm556_vm9, %v494_v48, %v552_v42  ;;  %v536_v58 = vadd.f32 %v535_v44, %v534_v29 }
  0xcd   : > { %v514_v17 = vrot.slane %v513_v11, 1  ;;  %v524_v18 = vrot.slane %v523_v13, 4  ;;  %v628_v19 = vpop.f32.mrf.mxu2  ;;  %v543_v38 = vadd.f32 %v542_v24, %v541_v10 }
  0xce   : > { %v518_v21 = vadd.f32 %v517_v14, %v516_v9  ;;  %v656_v22 = vmul.f32 %v628_v19, %v588_v12  ;;  %v651_v23 = vpop.f32.mrf.mxu3  ;;  %v508_v31 = vadd.f32 %v507_v16, %v506_v6 }
  0xcf   : > { %v515_v25 = vadd.f32 %v514_v17, %v513_v11  ;;  %v525_v26 = vadd.f32 %v524_v18, %v523_v13  ;;  %v657_v27 = vmul.f32 %v651_v23, %v589_v62  ;;  %v555_v51 = vrot.slane %v543_v38, 4 }
  0xd0   : > { %v519_v30 = vrot.slane %v518_v21, 2  ;;  %v658_v5 = vadd.f32 %v656_v22, %v654_v1 }
  0xd1   : > { %v553_v32 = vrot.slane %v515_v25, 4  ;;  %v526_v33 = vrot.slane %v525_v26, 2  ;;  %v665_v34 = vadd.f32 %v657_v27, %v655_v20  ;;  %v560_v7 = vsel %vm556_vm9, %v536_v58, %v555_v51 }
  0xd2   : > { %v520_v36 = vadd.f32 %v519_v30, %v518_v21  ;;  %v659_v37 = vrot.slane %v658_v5, 4  ;;  %v571_v11 = vrot.slane %v560_v7, 5 }
  0xd3   : > { %v527_v39 = vadd.f32 %v526_v33, %v525_v26  ;;  %v666_v40 = vrot.slane %v665_v34, 4  ;;  %v558_v41 = vsel %vm556_vm9, %v508_v31, %v553_v32 }
  0xd4   : > { %v660_v43 = vadd.f32 %v659_v37, %v658_v5  ;;  %v521_v45 = vrot.slane %v520_v36, 1  ;;  %v561_v50 = vrot.slane %v558_v41, 7 }
  0xd5   : > { %v528_v46 = vrot.slane %v527_v39, 1  ;;  %v667_v47 = vadd.f32 %v666_v40, %v665_v34 }
  0xd6   : > { %v661_v49 = vrot.slane %v660_v43, 2  ;;  %v522_v59 = vadd.f32 %v521_v45, %v520_v36  ;;  %v563_v63 = vsel %vm562_vm10, %v561_v50, %v557_v57 }
  0xd7   : > { %v529_v53 = vadd.f32 %v528_v46, %v527_v39  ;;  %v668_v55 = vrot.slane %v667_v47, 2  ;;  %v565_v9 = vsel %vm564_vm11, %v561_v50, %v563_v63 }
  0xd8   : > { %v662_v56 = vadd.f32 %v661_v49, %v660_v43 }
  0xd9   : > { %v554_v60 = vrot.slane %v529_v53, 4  ;;  %v669_v61 = vadd.f32 %v668_v55, %v667_v47 }
  0xda   : > { %v663_v3 = vrot.slane %v662_v56, 1 }
  0xdb   : > { %v670_v4 = vrot.slane %v669_v61, 1  ;;  %v559_v6 = vsel %vm556_vm9, %v522_v59, %v554_v60 }
  0xdc   : > { %v566_v52 = vrot.slane %v559_v6, 6  ;;  %v664_v13 = vadd.f32 %v663_v3, %v662_v56 }
  0xdd   : > { %v671_v8 = vadd.f32 %v670_v4, %v669_v61 }
  0xde   : > { %v568_v10 = vsel %vm567_vm12, %v566_v52, %v565_v9 }
  0xdf   : > { %v674_v12 = vrot.slane %v671_v8, 7  ;;  %v570_v54 = vsel %vm569_vm13, %v566_v52, %v568_v10 }
  0xe0   : > { %v573_v2 = vsel %vm572_vm14, %v571_v11, %v570_v54 }
  0xe1   : > { %v575_v62 = vsel %vm574_vm15, %v571_v11, %v573_v2  ;;  %v676_v15 = vsel %vm675_vm0, %v664_v13, %v674_v12 }
  0xe2   : > { %577 = vst [vmem:[%s251_s10] sm:$0xff] %v575_v62 }
  0xe3   : > { %1010 = shalt.err (!%p1007_p5)
}
  0xe4   : > { %921 = dma.vmem_to_hbm [thread:$0]  (%p1162_p4), %s705_s11, 128, %s707_s12, %s684_s24   ;;  %682 = vst.msk [vmem:[%s1311_s13] sm:$0x3] %vm1316_vm1, %v676_v15 }
  0xe5   : > { %s689_s9 = scalar_lea.sflag [#allocation5], %s1295_s22  ;;  %s1025_s18 = sshra.s32 %s1322_s21, 4  ;;  %s1026_s18 = int_to_ptr.hbm [resolvable:$true] %s1025_s18 }
  0xe6   : > { %s1027_s10 = scalar_lea.hbm %s1026_s18, 2  ;;  %s1031_s30 = scalar_lea.hbm %s1378_s4, 4 }
  0xe7   : > { %p1028_p6 = scmp.ne.s32.totalorder %s1026_s18, %s1027_s10  ;;  %p1032_p10 = scmp.lt.s32.totalorder %s1026_s18, %s1378_s4 }
  0xe8   : > { %p1033_p11 = scmp.lt.s32.totalorder %s1031_s30, %s1027_s10 }
  0xe9   : > { %p1029_p7 = pnand %p1028_p6, %p1162_p4 }
  0xea   : > { %p1034_p12 = por %p1033_p11, %p1032_p10 }
  0xeb   : > { %p1030_p9 = pneg %p1029_p7 }
  0xed   : > { %p1035_p13 = pnand %p1034_p12, %p1030_p9 }
  0xef   : > { %1038 = shalt.err (!%p1035_p13)
}
  0xf0   : > { %922 = dma.vmem_to_hbm [thread:$0]  (%p1162_p4), %s1320_s14, 32, %s1322_s21, %s689_s9  }
  0xf1 PF: > { %p932_p0 = scmp.ge.s32.totalorder %s1093_s20, 2  ;;  %s734_s22 = sand.u32 1, %s1073_s15  }
  0xf2   : > { %s735_s11 = scalar_lea.sflag [#allocation3], %s734_s22 }
  0xf3   : > { %p926_p1 = pnand %p932_p0, %p1169_p8 }
  0xf5   : > { %p927_p2 = pneg %p926_p1 }
  0xf7   : > { %1064 = dma.done.wait (%p927_p2), %s735_s11, 128  }
  0xf8   : > { %1066 = vsyncadd (%p927_p2), %s735_s11, 4294967168  ;;  %s745_s12 = scalar_lea.sflag [#allocation5], %s734_s22 }
  0xf9   : > { %1068 = dma.done.wait (%p927_p2), %s745_s12, 32  }
  0xfa   : > { %1070 = vsyncadd (%p927_p2), %s745_s12, 4294967264  ;;  %s21_s20 = sadd.s32 1, %s1093_s20   ;;  %s1387_s15 = smov %s1077_s16 }
  0xfb   : > { %p18_p3 = scmp.ge.s32.totalorder %s21_s20, 4   ;;  %s1388_s16 = smov %s1081_s17 }
  0xfc   : > { %s1389_s17 = smov %s1175_s28  ;;  %s1390_s18 = smov %s1089_s19 }
  0xfd   : > { %s1391_s19 = smov %s1393_s23  ;;  %20 = sbr.rel (!%p18_p3) target bundleno = 6 (0x6), region = 91 }
 0x102   :  { %751 = vsyncpa [#allocation3], 1 }
 0x103   :  { %753 = vsyncpa [#allocation3 + $0x1], 1 }
 0x104   :  { %754 = vsyncpa [#allocation5], 1 }
 0x105   :  { %756 = vsyncpa [#allocation5 + $0x1], 1 }

</bundles_post_ra>
